<compile_context>
chip_gen: v7x
topology: tpu7x:2x2x1
jax: 0.10.0
libtpu: 0.0.40
codegen_flags: <defaults>
</compile_context>

<pallas_src>
import functools

import jax
import jax.numpy as jnp
from jax.experimental import pallas as pl
from jax.experimental.pallas import tpu as pltpu

IN_DIM = 48 * 48   # 2304
HID_DIM = 100
OUT_DIM = 7


def mlp_softmax_kernel(x_ref, w1_ref, b1_ref, w2_ref, b2_ref, o_ref):
    # hidden = relu(x @ W1 + b1)   (MXU, f32 accumulation)
    h = jnp.dot(x_ref[...], w1_ref[...], preferred_element_type=jnp.float32)
    h = jnp.maximum(h + b1_ref[...], 0.0)          # (TB,100) + (1,100) broadcast
    # logits = hidden @ W2 + b2
    logits = jnp.dot(h, w2_ref[...].astype(jnp.float32),
                     preferred_element_type=jnp.float32)
    logits = logits + b2_ref[...]                  # (TB,7) + (1,7) broadcast
    # softmax over last dim (F.softmax defaults to dim=1 for 2-D input)
    m = jnp.max(logits, axis=-1, keepdims=True)
    e = jnp.exp(logits - m)
    denom = jnp.sum(e, axis=-1, keepdims=True)
    o_ref[...] = (e / denom).astype(o_ref.dtype)   # exact divide (tolerance)


def _round_up(n, m):
    return ((n + m - 1) // m) * m


@functools.partial(jax.jit, static_argnames=("block_b", "use_bf16"))
def model3_forward(x, w1, b1, w2, b2, *, block_b=1024, use_bf16=False):
    """x: (B, 2304); w1: (2304, 100); b1: (1, 100); w2: (100, 7); b2: (1, 7).

    Weights are stored pre-transposed as (in, out) so the kernel does x @ W.
    """
    B = x.shape[0]

    if use_bf16:
        # Halves the dominant HBM traffic (x) and runs the MXU at native bf16
        # rate. Only a real win if x is already bf16 / the cast fuses upstream.
        x = x.astype(jnp.bfloat16)
        w1 = w1.astype(jnp.bfloat16)

    # Batch tile: multiple of 8 sublanes, chosen so no explicit padding copy of
    # x is needed; the last grid block may be ragged (masked by Pallas).
    n_blocks = max(1, pl.cdiv(B, block_b))
    if B >= 16:
        n_blocks = max(n_blocks, 2)   # keep grid >= 2 so v7x megacore can split
    tb = _round_up(pl.cdiv(B, n_blocks), 8)
    grid = (pl.cdiv(B, tb),)

    dtype_bytes = jnp.dtype(x.dtype).itemsize
    cost = pl.CostEstimate(
        flops=2 * B * IN_DIM * HID_DIM + 2 * B * HID_DIM * OUT_DIM,
        transcendentals=B * OUT_DIM,
        bytes_accessed=(B * IN_DIM * dtype_bytes
                        + IN_DIM * HID_DIM * dtype_bytes
                        + HID_DIM * OUT_DIM * 4
                        + (HID_DIM + OUT_DIM) * 4
                        + B * OUT_DIM * 4),
    )

    return pl.pallas_call(
        mlp_softmax_kernel,
        out_shape=jax.ShapeDtypeStruct((B, OUT_DIM), jnp.float32),
        grid_spec=pltpu.PrefetchScalarGridSpec(
            num_scalar_prefetch=0,
            grid=grid,
            in_specs=[
                pl.BlockSpec((tb, IN_DIM), lambda i: (i, 0)),        # x: batch-tiled
                pl.BlockSpec((IN_DIM, HID_DIM), lambda i: (0, 0)),   # W1: resident
                pl.BlockSpec((1, HID_DIM), lambda i: (0, 0)),        # b1: resident
                pl.BlockSpec((HID_DIM, OUT_DIM), lambda i: (0, 0)),  # W2: resident
                pl.BlockSpec((1, OUT_DIM), lambda i: (0, 0)),        # b2: resident
            ],
            out_specs=pl.BlockSpec((tb, OUT_DIM), lambda i: (i, 0)),
        ),
        compiler_params=pltpu.CompilerParams(
            dimension_semantics=("parallel",),
            vmem_limit_bytes=48 * 1024 * 1024),
        cost_estimate=cost,
    )(x, w1, b1, w2, b2)


if __name__ == "__main__":
    key = jax.random.PRNGKey(0)
    kx, k1, k2, k3, k4 = jax.random.split(key, 5)

    B = 2
    # Deterministic synthetic parameters (Linear weight stored transposed: (in, out)).
    x = jax.random.normal(kx, (B, IN_DIM), dtype=jnp.float32)
    w1 = jax.random.normal(k1, (IN_DIM, HID_DIM), dtype=jnp.float32) * 0.02
    b1 = jax.random.normal(k2, (1, HID_DIM), dtype=jnp.float32) * 0.02
    w2 = jax.random.normal(k3, (HID_DIM, OUT_DIM), dtype=jnp.float32) * 0.02
    b2 = jax.random.normal(k4, (1, OUT_DIM), dtype=jnp.float32) * 0.02

    out = jax.block_until_ready(model3_forward(x, w1, b1, w2, b2))

    # Plain-JAX reference. Tolerance allows for the difference between the
    # kernel's MXU f32 (multi-pass bf16) matmuls and XLA's default-precision
    # matmuls in the reference; probabilities are O(0.1), so 2e-3 absolute is
    # still tight enough to catch any structural error (missing relu, wrong
    # axis, wrong bias, etc.).
    h_ref = jnp.maximum(x @ w1 + b1, 0.0)
    ref = jax.nn.softmax(h_ref @ w2 + b2, axis=-1)

    assert out.shape == (B, OUT_DIM)
    assert bool(jnp.all(jnp.isfinite(out)))
    max_err = float(jnp.max(jnp.abs(out - ref)))
    assert jnp.allclose(out, ref, atol=2e-3, rtol=2e-2), f"max abs err {max_err}"
    assert jnp.allclose(jnp.sum(out, axis=-1), 1.0, atol=1e-3)

    print("KERNEL_OK")
</pallas_src>

<mosaic_0001>
module attributes {stable_mosaic.version = 11 : i64} {
  func.func @mlp_softmax_kernel(%arg0: i32, %arg1: memref<8x2304xf32, #tpu.memory_space<vmem>>, %arg2: memref<2304x100xf32, #tpu.memory_space<vmem>>, %arg3: memref<1x100xf32, #tpu.memory_space<vmem>>, %arg4: memref<100x7xf32, #tpu.memory_space<vmem>>, %arg5: memref<1x7xf32, #tpu.memory_space<vmem>>, %arg6: memref<8x7xf32, #tpu.memory_space<vmem>>) attributes {dimension_semantics = [#tpu.dimension_semantics<parallel>], iteration_bounds = array<i64: 1>, scalar_prefetch = 0 : i64, scratch_operands = 0 : i64, tpu.core_type = #tpu.core_type<tc>, window_params = [{transform_indices = @transform_0, window_bounds = array<i64: 8, 2304>}, {pipeline_mode = #tpu.pipeline_mode<synchronous>, transform_indices = @transform_1, window_bounds = array<i64: 2304, 100>}, {pipeline_mode = #tpu.pipeline_mode<synchronous>, transform_indices = @transform_2, window_bounds = array<i64: 1, 100>}, {pipeline_mode = #tpu.pipeline_mode<synchronous>, transform_indices = @transform_3, window_bounds = array<i64: 100, 7>}, {pipeline_mode = #tpu.pipeline_mode<synchronous>, transform_indices = @transform_4, window_bounds = array<i64: 1, 7>}, {transform_indices = @transform_5, window_bounds = array<i64: 8, 7>}]} {
    %c0 = arith.constant 0 : index
    %c0_0 = arith.constant 0 : index
    %0 = vector.load %arg1[%c0, %c0_0] : memref<8x2304xf32, #tpu.memory_space<vmem>>, vector<8x2304xf32>
    %c0_1 = arith.constant 0 : index
    %c0_2 = arith.constant 0 : index
    %1 = vector.load %arg2[%c0_1, %c0_2] : memref<2304x100xf32, #tpu.memory_space<vmem>>, vector<2304x100xf32>
    %cst = arith.constant dense<0.000000e+00> : vector<8x100xf32>
    %2 = tpu.matmul %0, %1, %cst {dimension_numbers = #tpu.dot_dimension_numbers<[1], [0], [0], [1], [0, 0, 1, 1], [], []>} : vector<8x2304xf32>, vector<2304x100xf32>, vector<8x100xf32> -> vector<8x100xf32>
    %c0_3 = arith.constant 0 : index
    %c0_4 = arith.constant 0 : index
    %3 = vector.load %arg3[%c0_3, %c0_4] : memref<1x100xf32, #tpu.memory_space<vmem>>, vector<1x100xf32>
    %4 = vector.broadcast %3 : vector<1x100xf32> to vector<8x100xf32>
    %5 = arith.addf %2, %4 : vector<8x100xf32>
    %cst_5 = arith.constant 0.000000e+00 : f32
    %6 = vector.broadcast %cst_5 : f32 to vector<8x100xf32>
    %7 = arith.maximumf %5, %6 : vector<8x100xf32>
    %c0_6 = arith.constant 0 : index
    %c0_7 = arith.constant 0 : index
    %8 = vector.load %arg4[%c0_6, %c0_7] : memref<100x7xf32, #tpu.memory_space<vmem>>, vector<100x7xf32>
    %cst_8 = arith.constant dense<0.000000e+00> : vector<8x7xf32>
    %9 = tpu.matmul %7, %8, %cst_8 {dimension_numbers = #tpu.dot_dimension_numbers<[1], [0], [0], [1], [0, 0, 1, 1], [], []>} : vector<8x100xf32>, vector<100x7xf32>, vector<8x7xf32> -> vector<8x7xf32>
    %c0_9 = arith.constant 0 : index
    %c0_10 = arith.constant 0 : index
    %10 = vector.load %arg5[%c0_9, %c0_10] : memref<1x7xf32, #tpu.memory_space<vmem>>, vector<1x7xf32>
    %11 = vector.broadcast %10 : vector<1x7xf32> to vector<8x7xf32>
    %12 = arith.addf %9, %11 : vector<8x7xf32>
    %cst_11 = arith.constant dense<0xFF800000> : vector<8xf32>
    %13 = vector.multi_reduction <maximumf>, %12, %cst_11 [1] : vector<8x7xf32> to vector<8xf32>
    %14 = vector.shape_cast %13 : vector<8xf32> to vector<8x1xf32>
    %15 = vector.broadcast %14 : vector<8x1xf32> to vector<8x7xf32>
    %16 = arith.subf %12, %15 : vector<8x7xf32>
    %17 = math.exp %16 : vector<8x7xf32>
    %cst_12 = arith.constant dense<0.000000e+00> : vector<8xf32>
    %18 = vector.multi_reduction <add>, %17, %cst_12 [1] : vector<8x7xf32> to vector<8xf32>
    %19 = vector.shape_cast %18 : vector<8xf32> to vector<8x1xf32>
    %20 = vector.broadcast %19 : vector<8x1xf32> to vector<8x7xf32>
    %21 = arith.divf %17, %20 : vector<8x7xf32>
    %c0_13 = arith.constant 0 : index
    %c0_14 = arith.constant 0 : index
    %22 = vector.load %arg6[%c0_13, %c0_14] : memref<8x7xf32, #tpu.memory_space<vmem>>, vector<8x7xf32>
    tpu.vector_store %arg6[%c0_13, %c0_14], %21 {strides = array<i32>} : memref<8x7xf32, #tpu.memory_space<vmem>>, vector<8x7xf32>,
    return
  }
  func.func @transform_0(%arg0: i32) -> (i32, i32) {
    %c0_i32 = arith.constant 0 : i32
    %c0_i32_0 = arith.constant 0 : i32
    return %arg0, %c0_i32 : i32, i32
  }
  func.func @transform_1(%arg0: i32) -> (i32, i32) {
    %c0_i32 = arith.constant 0 : i32
    %c0_i32_0 = arith.constant 0 : i32
    %c0_i32_1 = arith.constant 0 : i32
    return %c0_i32, %c0_i32_0 : i32, i32
  }
  func.func @transform_2(%arg0: i32) -> (i32, i32) {
    %c0_i32 = arith.constant 0 : i32
    %c0_i32_0 = arith.constant 0 : i32
    %c0_i32_1 = arith.constant 0 : i32
    return %c0_i32, %c0_i32_0 : i32, i32
  }
  func.func @transform_3(%arg0: i32) -> (i32, i32) {
    %c0_i32 = arith.constant 0 : i32
    %c0_i32_0 = arith.constant 0 : i32
    %c0_i32_1 = arith.constant 0 : i32
    return %c0_i32, %c0_i32_0 : i32, i32
  }
  func.func @transform_4(%arg0: i32) -> (i32, i32) {
    %c0_i32 = arith.constant 0 : i32
    %c0_i32_0 = arith.constant 0 : i32
    %c0_i32_1 = arith.constant 0 : i32
    return %c0_i32, %c0_i32_0 : i32, i32
  }
  func.func @transform_5(%arg0: i32) -> (i32, i32) {
    %c0_i32 = arith.constant 0 : i32
    %c0_i32_0 = arith.constant 0 : i32
    return %arg0, %c0_i32 : i32, i32
  }
}

</mosaic_0001>

<bundles_post_ra>
// kernel: model3_forward.1
= control target key start
LH: loop header
LB: loop body
LE: loop exit
PB: predicated region body
PF: predicated region fallthrough
CT: control target
= control target key end

     0   :  { %10 = vsyncpa [#allocation3], 0  ;;  %v2023_v51 = vmov 1983009808   ;;  %v363_v53 = vlaneseq  ;;  %vm1191_vm0 = vcmask 1043456   ;;  %vm2026_vm1 = vmmov 0   ;;  %s3114_s0 = inlined_call_operand.vmem [shape: f32[2,2304], index: 0, kind: input, shape index: {}]   ;;  %s3115_s1 = inlined_call_operand.vmem [shape: f32[2304,100], index: 1, kind: input, shape index: {}]   ;;  %s3116_s2 = inlined_call_operand.vmem [shape: f32[1,100], index: 2, kind: input, shape index: {}]   ;;  %s3117_s3 = inlined_call_operand.vmem [shape: f32[100,7], index: 3, kind: input, shape index: {}]   ;;  %s3118_s4 = inlined_call_operand.vmem [shape: f32[1,7], index: 4, kind: input, shape index: {}]   ;;  %s3119_s5 = inlined_call_operand.hbm [shape: f32[2,7], index: 5, kind: output, shape index: {}]  }
   0x1   :  { %v57_v0 = vld [vmem:[%s3115_s1 + $0x80] sm:$0xff]  ;;  %v58_v1 = vld [vmem:[%s3115_s1 + $0x88] sm:$0xff]  ;;  %v59_v12 = vld [vmem:[%s3115_s1 + $0x90] sm:$0xff]  ;;  %v361_v52 = vunpack.c.l.s4 %v2023_v51  ;;  %vm1187_vm2 = vcmask 818176   ;;  %vm1265_vm3 = vcmask 56320  }
   0x2   :  { %v1656_v2 = vpack.c.bf16 %v58_v1, %v57_v0  ;;  %v41_v3 = vld [vmem:[%s3115_s1] sm:$0xff]  ;;  %v42_v4 = vld [vmem:[%s3115_s1 + $0x8] sm:$0xff]  ;;  %v60_v13 = vld [vmem:[%s3115_s1 + $0x98] sm:$0xff] }
   0x3   :  { %v89_v5 = vld [vmem:[%s3115_s1 + $0x180] sm:$0xff]  ;;  %v1658_v6 = vpack.c.bf16 %v42_v4, %v41_v3  ;;  %v90_v7 = vld [vmem:[%s3115_s1 + $0x188] sm:$0xff]  ;;  %v43_v14 = vld [vmem:[%s3115_s1 + $0x10] sm:$0xff]  ;;  %v1660_v15 = vpack.c.bf16 %v60_v13, %v59_v12  ;;  %v364_v3 = vshrl.u32 %v363_v53, 7 }
   0x4   :  { %v73_v8 = vld [vmem:[%s3115_s1 + $0x100] sm:$0xff]  ;;  %v74_v9 = vld [vmem:[%s3115_s1 + $0x108] sm:$0xff]  ;;  %1657 = vmatprep.subr.bf16.mxu0 %v1656_v2  ;;  %v1688_v10 = vpack.c.bf16 %v90_v7, %v89_v5  ;;  %v44_v16 = vld [vmem:[%s3115_s1 + $0x18] sm:$0xff]  ;;  %v362_v2 = vunpack.c.0.s8 %v361_v52 }
   0x5   :  { %v1690_v11 = vpack.c.bf16 %v74_v9, %v73_v8  ;;  %1659 = vmatpush3.bf16.msra.mxu0 %v1658_v6  ;;  %v91_v17 = vld [vmem:[%s3115_s1 + $0x190] sm:$0xff]  ;;  %v92_v18 = vld [vmem:[%s3115_s1 + $0x198] sm:$0xff]  ;;  %v1662_v19 = vpack.c.bf16 %v44_v16, %v43_v14  ;;  %v61_v23 = vld [vmem:[%s3115_s1 + $0xa0] sm:$0xff] }
   0x6   :  { %1689 = vmatprep.subr.bf16.mxu1 %v1688_v10  ;;  %v1692_v20 = vpack.c.bf16 %v92_v18, %v91_v17  ;;  %v75_v21 = vld [vmem:[%s3115_s1 + $0x110] sm:$0xff]  ;;  %v76_v22 = vld [vmem:[%s3115_s1 + $0x118] sm:$0xff]  ;;  %1661 = vmatprep.subr.bf16.mxu0 %v1660_v15  ;;  %v62_v25 = vld [vmem:[%s3115_s1 + $0xa8] sm:$0xff] }
   0x7   :  { %1691 = vmatpush3.bf16.msra.mxu1 %v1690_v11  ;;  %v1694_v24 = vpack.c.bf16 %v76_v22, %v75_v21  ;;  %v45_v26 = vld [vmem:[%s3115_s1 + $0x20] sm:$0xff]  ;;  %v46_v27 = vld [vmem:[%s3115_s1 + $0x28] sm:$0xff]  ;;  %v1664_v28 = vpack.c.bf16 %v62_v25, %v61_v23  ;;  %v63_v35 = vld [vmem:[%s3115_s1 + $0xb0] sm:$0xff] }
   0x8   :  { %1693 = vmatprep.subr.bf16.mxu1 %v1692_v20  ;;  %v93_v29 = vld [vmem:[%s3115_s1 + $0x1a0] sm:$0xff]  ;;  %v94_v30 = vld [vmem:[%s3115_s1 + $0x1a8] sm:$0xff]  ;;  %v1666_v32 = vpack.c.bf16 %v46_v27, %v45_v26  ;;  %v64_v36 = vld [vmem:[%s3115_s1 + $0xb8] sm:$0xff]  ;;  %v2228_v20 = vsub.s32 %v362_v2, %v364_v3 }
   0x9   :  { %v77_v31 = vld [vmem:[%s3115_s1 + $0x120] sm:$0xff]  ;;  %1663 = vmatpush3.bf16.msra.mxu0 %v1662_v19  ;;  %v1696_v33 = vpack.c.bf16 %v94_v30, %v93_v29  ;;  %v78_v34 = vld [vmem:[%s3115_s1 + $0x128] sm:$0xff]  ;;  %v1668_v37 = vpack.c.bf16 %v64_v36, %v63_v35  ;;  %v47_v38 = vld [vmem:[%s3115_s1 + $0x30] sm:$0xff] }
   0xa   :  { %1665 = vmatprep.subr.bf16.mxu0 %v1664_v28  ;;  %v48_v39 = vld [vmem:[%s3115_s1 + $0x38] sm:$0xff]  ;;  %v95_v40 = vld [vmem:[%s3115_s1 + $0x1b0] sm:$0xff]  ;;  %v1698_v41 = vpack.c.bf16 %v78_v34, %v77_v31  ;;  %v65_v46 = vld [vmem:[%s3115_s1 + $0xc0] sm:$0xff] }
   0xb   :  { %1695 = vmatpush3.bf16.msra.mxu1 %v1694_v24  ;;  %v96_v42 = vld [vmem:[%s3115_s1 + $0x1b8] sm:$0xff]  ;;  %v79_v43 = vld [vmem:[%s3115_s1 + $0x130] sm:$0xff]  ;;  %v66_v47 = vld [vmem:[%s3115_s1 + $0xc8] sm:$0xff]  ;;  %v1670_v48 = vpack.c.bf16 %v48_v39, %v47_v38 }
   0xc   :  { %1697 = vmatprep.subr.bf16.mxu1 %v1696_v33  ;;  %v1700_v44 = vpack.c.bf16 %v96_v42, %v95_v40  ;;  %v80_v45 = vld [vmem:[%s3115_s1 + $0x138] sm:$0xff]  ;;  %v97_v49 = vld [vmem:[%s3115_s1 + $0x1c0] sm:$0xff]  ;;  %v98_v50 = vld [vmem:[%s3115_s1 + $0x1c8] sm:$0xff]  ;;  %v1672_v54 = vpack.c.bf16 %v66_v47, %v65_v46 }
   0xd   :  { %1667 = vmatpush3.bf16.msra.mxu0 %v1666_v32  ;;  %v49_v55 = vld [vmem:[%s3115_s1 + $0x40] sm:$0xff]  ;;  %v50_v56 = vld [vmem:[%s3115_s1 + $0x48] sm:$0xff]  ;;  %v1702_v57 = vpack.c.bf16 %v80_v45, %v79_v43  ;;  %v67_v58 = vld [vmem:[%s3115_s1 + $0xd0] sm:$0xff]  ;;  %v1704_v60 = vpack.c.bf16 %v98_v50, %v97_v49 }
   0xe   :  { %1669 = vmatprep.subr.bf16.mxu0 %v1668_v37  ;;  %v68_v59 = vld [vmem:[%s3115_s1 + $0xd8] sm:$0xff]  ;;  %v81_v61 = vld [vmem:[%s3115_s1 + $0x140] sm:$0xff]  ;;  %v82_v62 = vld [vmem:[%s3115_s1 + $0x148] sm:$0xff]  ;;  %v1674_v63 = vpack.c.bf16 %v50_v56, %v49_v55 }
   0xf   :  { %1699 = vmatpush3.bf16.msra.mxu1 %v1698_v41  ;;  %v99_v0 = vld [vmem:[%s3115_s1 + $0x1d0] sm:$0xff]  ;;  %v100_v1 = vld [vmem:[%s3115_s1 + $0x1d8] sm:$0xff]  ;;  %v1676_v4 = vpack.c.bf16 %v68_v59, %v67_v58  ;;  %v1706_v8 = vpack.c.bf16 %v82_v62, %v81_v61  ;;  %v69_v10 = vld [vmem:[%s3115_s1 + $0xe0] sm:$0xff] }
  0x10   :  { %1701 = vmatprep.subr.bf16.mxu1 %v1700_v44  ;;  %v51_v5 = vld [vmem:[%s3115_s1 + $0x50] sm:$0xff]  ;;  %v52_v6 = vld [vmem:[%s3115_s1 + $0x58] sm:$0xff]  ;;  %v70_v11 = vld [vmem:[%s3115_s1 + $0xe8] sm:$0xff]  ;;  %v1708_v12 = vpack.c.bf16 %v100_v1, %v99_v0 }
  0x11   :  { %1671 = vmatpush3.bf16.msra.mxu0 %v1670_v48  ;;  %v83_v7 = vld [vmem:[%s3115_s1 + $0x150] sm:$0xff]  ;;  %v84_v9 = vld [vmem:[%s3115_s1 + $0x158] sm:$0xff]  ;;  %v53_v13 = vld [vmem:[%s3115_s1 + $0x60] sm:$0xff]  ;;  %v1678_v16 = vpack.c.bf16 %v52_v6, %v51_v5  ;;  %v1680_v21 = vpack.c.bf16 %v70_v11, %v69_v10 }
  0x12   :  { %1673 = vmatprep.subr.bf16.mxu0 %v1672_v54  ;;  %v54_v14 = vld [vmem:[%s3115_s1 + $0x68] sm:$0xff]  ;;  %v101_v15 = vld [vmem:[%s3115_s1 + $0x1e0] sm:$0xff]  ;;  %v71_v18 = vld [vmem:[%s3115_s1 + $0xf0] sm:$0xff]  ;;  %v1710_v22 = vpack.c.bf16 %v84_v9, %v83_v7 }
  0x13   :  { %1703 = vmatpush3.bf16.msra.mxu1 %v1702_v57  ;;  %v102_v17 = vld [vmem:[%s3115_s1 + $0x1e8] sm:$0xff]  ;;  %v72_v19 = vld [vmem:[%s3115_s1 + $0xf8] sm:$0xff]  ;;  %v1969_v23 = vld [vmem:[%s3114_s0] ss:$36 sps:$4 sm:$0xff]   ;;  %v1682_v29 = vpack.c.bf16 %v54_v14, %v53_v13 }
  0x14   :  { %1705 = vmatprep.subr.bf16.mxu1 %v1704_v60  ;;  %v1971_v24 = vld [vmem:[%s3114_s0 + $0x48] ss:$36 sps:$4 sm:$0xff]   ;;  %v1712_v25 = vpack.c.bf16 %v102_v17, %v101_v15  ;;  %v85_v26 = vld [vmem:[%s3115_s1 + $0x160] sm:$0xff]  ;;  %v103_v28 = vld [vmem:[%s3115_s1 + $0x1f0] sm:$0xff]  ;;  %v366_v31 = vrot.slane %v1969_v23, %v2228_v20  ;;  %v1684_v35 = vpack.c.bf16 %v72_v19, %v71_v18 }
  0x15   :  { %1675 = vmatpush3.bf16.msra.mxu0 %v1674_v63  ;;  %v86_v27 = vld [vmem:[%s3115_s1 + $0x168] sm:$0xff]  ;;  %v104_v30 = vld [vmem:[%s3115_s1 + $0x1f8] sm:$0xff]  ;;  %v380_v32 = vrot.slane %v1971_v24, %v2228_v20  ;;  %v55_v36 = vld [vmem:[%s3115_s1 + $0x70] sm:$0xff] }
  0x16   :  { %1677 = vmatprep.subr.bf16.mxu0 %v1676_v4  ;;  %v1973_v33 = vld [vmem:[%s3114_s0 + $0x4] ss:$36 sps:$4 sm:$0xff]   ;;  %v1974_v34 = vld [vmem:[%s3114_s0 + $0x4c] ss:$36 sps:$4 sm:$0xff]   ;;  %v56_v37 = vld [vmem:[%s3115_s1 + $0x78] sm:$0xff]  ;;  %v1714_v38 = vpack.c.bf16 %v86_v27, %v85_v26  ;;  %v1716_v44 = vpack.c.bf16 %v104_v30, %v103_v28 }
  0x17   :  { %1707 = vmatpush3.bf16.msra.mxu1 %v1706_v8  ;;  %v389_v39 = vcombine.high %v366_v31, %v380_v32  ;;  %v121_v40 = vld [vmem:[%s3115_s1 + $0x280] sm:$0xff]  ;;  %v122_v41 = vld [vmem:[%s3115_s1 + $0x288] sm:$0xff]  ;;  %v373_v42 = vrot.slane %v1973_v33, %v2228_v20  ;;  %v387_v43 = vrot.slane %v1974_v34, %v2228_v20  ;;  %v87_v45 = vld [vmem:[%s3115_s1 + $0x170] sm:$0xff]  ;;  %v1686_v47 = vpack.c.bf16 %v56_v37, %v55_v36 }
  0x18   :  { %1709 = vmatprep.subr.bf16.mxu1 %v1708_v12  ;;  %v88_v46 = vld [vmem:[%s3115_s1 + $0x178] sm:$0xff]  ;;  %v153_v49 = vld [vmem:[%s3115_s1 + $0x380] sm:$0xff]  ;;  %v154_v50 = vld [vmem:[%s3115_s1 + $0x388] sm:$0xff]  ;;  %v1720_v51 = vpack.c.bf16 %v122_v41, %v121_v40  ;;  %v388_v57 = vcombine.low %v366_v31, %v380_v32 }
  0x19   :  { %1679 = vmatpush3.bf16.msra.mxu0 %v1678_v16  ;;  %600 = vmatprep.mubr.f32.mxu0 %v389_v39  ;;  %v391_v48 = vcombine.high %v373_v42, %v387_v43  ;;  %v105_v52 = vld [vmem:[%s3115_s1 + $0x200] sm:$0xff]  ;;  %v106_v53 = vld [vmem:[%s3115_s1 + $0x208] sm:$0xff]  ;;  %v1718_v54 = vpack.c.bf16 %v88_v46, %v87_v45  ;;  %v123_v55 = vld [vmem:[%s3115_s1 + $0x290] sm:$0xff]  ;;  %v1752_v58 = vpack.c.bf16 %v154_v50, %v153_v49 }
  0x1a   :  { %1681 = vmatprep.subr.bf16.mxu0 %v1680_v21  ;;  %v124_v56 = vld [vmem:[%s3115_s1 + $0x298] sm:$0xff]  ;;  %v137_v59 = vld [vmem:[%s3115_s1 + $0x300] sm:$0xff]  ;;  %v138_v60 = vld [vmem:[%s3115_s1 + $0x308] sm:$0xff]  ;;  %v1722_v61 = vpack.c.bf16 %v106_v53, %v105_v52  ;;  %v390_v0 = vcombine.low %v373_v42, %v387_v43 }
  0x1b   :  { %1711 = vmatpush3.bf16.msra.mxu1 %v1710_v22  ;;  %670 = vmatprep.mubr.f32.mxu1 %v391_v48  ;;  %v155_v62 = vld [vmem:[%s3115_s1 + $0x390] sm:$0xff]  ;;  %v156_v63 = vld [vmem:[%s3115_s1 + $0x398] sm:$0xff]  ;;  %v1724_v1 = vpack.c.bf16 %v124_v56, %v123_v55  ;;  %v1754_v4 = vpack.c.bf16 %v138_v60, %v137_v59  ;;  %v125_v5 = vld [vmem:[%s3115_s1 + $0x2a0] sm:$0xff] }
  0x1c   :  { %1713 = vmatprep.subr.bf16.mxu1 %v1712_v25  ;;  %v107_v2 = vld [vmem:[%s3115_s1 + $0x210] sm:$0xff]  ;;  %v108_v3 = vld [vmem:[%s3115_s1 + $0x218] sm:$0xff]  ;;  %v126_v6 = vld [vmem:[%s3115_s1 + $0x2a8] sm:$0xff]  ;;  %v1756_v7 = vpack.c.bf16 %v156_v63, %v155_v62 }
  0x1d   :  { %1683 = vmatpush3.bf16.msra.mxu0 %v1682_v29  ;;  %v139_v8 = vld [vmem:[%s3115_s1 + $0x310] sm:$0xff]  ;;  %v140_v9 = vld [vmem:[%s3115_s1 + $0x318] sm:$0xff]  ;;  %v1726_v10 = vpack.c.bf16 %v108_v3, %v107_v2  ;;  %v157_v11 = vld [vmem:[%s3115_s1 + $0x3a0] sm:$0xff]  ;;  %v1728_v13 = vpack.c.bf16 %v126_v6, %v125_v5 }
  0x1e   :  { %1685 = vmatprep.subr.bf16.mxu0 %v1684_v35  ;;  %v158_v12 = vld [vmem:[%s3115_s1 + $0x3a8] sm:$0xff]  ;;  %v109_v14 = vld [vmem:[%s3115_s1 + $0x220] sm:$0xff]  ;;  %v1758_v16 = vpack.c.bf16 %v140_v9, %v139_v8  ;;  %v127_v17 = vld [vmem:[%s3115_s1 + $0x2b0] sm:$0xff] }
  0x1f   :  { %1715 = vmatpush3.bf16.msra.mxu1 %v1714_v38  ;;  %v110_v15 = vld [vmem:[%s3115_s1 + $0x228] sm:$0xff]  ;;  %v128_v18 = vld [vmem:[%s3115_s1 + $0x2b8] sm:$0xff]  ;;  %v1760_v19 = vpack.c.bf16 %v158_v12, %v157_v11  ;;  %v141_v21 = vld [vmem:[%s3115_s1 + $0x320] sm:$0xff] }
  0x20   :  { %1717 = vmatprep.subr.bf16.mxu1 %v1716_v44  ;;  %v142_v22 = vld [vmem:[%s3115_s1 + $0x328] sm:$0xff]  ;;  %v1730_v23 = vpack.c.bf16 %v110_v15, %v109_v14  ;;  %v159_v24 = vld [vmem:[%s3115_s1 + $0x3b0] sm:$0xff]  ;;  %v160_v25 = vld [vmem:[%s3115_s1 + $0x3b8] sm:$0xff]  ;;  %v1732_v26 = vpack.c.bf16 %v128_v18, %v127_v17 }
  0x21   :  { %1687 = vmatpush3.bf16.msra.mxu0 %v1686_v47  ;;  %v111_v27 = vld [vmem:[%s3115_s1 + $0x230] sm:$0xff]  ;;  %v112_v28 = vld [vmem:[%s3115_s1 + $0x238] sm:$0xff]  ;;  %v1762_v30 = vpack.c.bf16 %v142_v22, %v141_v21  ;;  %v129_v32 = vld [vmem:[%s3115_s1 + $0x2c0] sm:$0xff]  ;;  %v1764_v34 = vpack.c.bf16 %v160_v25, %v159_v24 }
  0x22   :  { %1721 = vmatprep.subr.bf16.mxu0 %v1720_v51  ;;  %v143_v29 = vld [vmem:[%s3115_s1 + $0x330] sm:$0xff]  ;;  %v144_v31 = vld [vmem:[%s3115_s1 + $0x338] sm:$0xff]  ;;  %v130_v33 = vld [vmem:[%s3115_s1 + $0x2c8] sm:$0xff]  ;;  %v1734_v38 = vpack.c.bf16 %v112_v28, %v111_v27 }
  0x23   :  { %1719 = vmatpush3.bf16.msra.mxu1 %v1718_v54  ;;  %v113_v35 = vld [vmem:[%s3115_s1 + $0x240] sm:$0xff]  ;;  %v114_v36 = vld [vmem:[%s3115_s1 + $0x248] sm:$0xff]  ;;  %v131_v40 = vld [vmem:[%s3115_s1 + $0x2d0] sm:$0xff]  ;;  %v1736_v42 = vpack.c.bf16 %v130_v33, %v129_v32  ;;  %v1766_v43 = vpack.c.bf16 %v144_v31, %v143_v29 }
  0x24   :  { %601 = vmatmul.mubr.f32.vlgmr.msra.gmra.mrb[0].mxu0 %v388_v57  ;;  %1753 = vmatprep.subr.bf16.mxu1 %v1752_v58  ;;  %v161_v37 = vld [vmem:[%s3115_s1 + $0x3c0] sm:$0xff]  ;;  %v162_v39 = vld [vmem:[%s3115_s1 + $0x3c8] sm:$0xff]  ;;  %v132_v41 = vld [vmem:[%s3115_s1 + $0x2d8] sm:$0xff]  ;;  %v1738_v50 = vpack.c.bf16 %v114_v36, %v113_v35 }
  0x25   :  { %1723 = vmatpush3.bf16.msra.mxu0 %v1722_v61  ;;  %v1975_v44 = vld [vmem:[%s3114_s0 + $0x8] ss:$36 sps:$4 sm:$0xff]   ;;  %v1977_v45 = vld [vmem:[%s3114_s0 + $0x50] ss:$36 sps:$4 sm:$0xff]   ;;  %v1768_v46 = vpack.c.bf16 %v162_v39, %v161_v37  ;;  %v145_v47 = vld [vmem:[%s3115_s1 + $0x340] sm:$0xff]  ;;  %v1740_v56 = vpack.c.bf16 %v132_v41, %v131_v40 }
  0x26   :  { %671 = vmatmul.mubr.f32.vlgmr.msra.gmra.mrb[0].mxu1 %v390_v0  ;;  %1725 = vmatprep.subr.bf16.mxu0 %v1724_v1  ;;  %v146_v48 = vld [vmem:[%s3115_s1 + $0x348] sm:$0xff]  ;;  %v163_v49 = vld [vmem:[%s3115_s1 + $0x3d0] sm:$0xff]  ;;  %v164_v51 = vld [vmem:[%s3115_s1 + $0x3d8] sm:$0xff]  ;;  %v2409_v52 = vrot.slane %v1975_v44, %v2228_v20  ;;  %v2412_v53 = vrot.slane %v1977_v45, %v2228_v20 }
  0x27   :  { %1755 = vmatpush3.bf16.msra.mxu1 %v1754_v4  ;;  %v1979_v54 = vld [vmem:[%s3114_s0 + $0xc] ss:$36 sps:$4 sm:$0xff]   ;;  %v1980_v55 = vld [vmem:[%s3114_s0 + $0x54] ss:$36 sps:$4 sm:$0xff]   ;;  %v1770_v59 = vpack.c.bf16 %v146_v48, %v145_v47  ;;  %v133_v60 = vld [vmem:[%s3115_s1 + $0x2e0] sm:$0xff]  ;;  %v1772_v1 = vpack.c.bf16 %v164_v51, %v163_v49 }
  0x28   :  { %1757 = vmatprep.subr.bf16.mxu1 %v1756_v7  ;;  %v115_v57 = vld [vmem:[%s3115_s1 + $0x250] sm:$0xff]  ;;  %v116_v58 = vld [vmem:[%s3115_s1 + $0x258] sm:$0xff]  ;;  %v134_v61 = vld [vmem:[%s3115_s1 + $0x2e8] sm:$0xff]  ;;  %v425_v62 = vcombine.high %v2409_v52, %v2412_v53  ;;  %v2435_v63 = vrot.slane %v1979_v54, %v2228_v20  ;;  %v2438_v0 = vrot.slane %v1980_v55, %v2228_v20  ;;  %v424_v39 = vcombine.low %v2409_v52, %v2412_v53 }
  0x29   :  { %1727 = vmatpush3.bf16.msra.mxu0 %v1726_v10  ;;  %v147_v2 = vld [vmem:[%s3115_s1 + $0x350] sm:$0xff]  ;;  %v148_v3 = vld [vmem:[%s3115_s1 + $0x358] sm:$0xff]  ;;  %v1742_v4 = vpack.c.bf16 %v116_v58, %v115_v57  ;;  %v165_v5 = vld [vmem:[%s3115_s1 + $0x3e0] sm:$0xff]  ;;  %v1744_v8 = vpack.c.bf16 %v134_v61, %v133_v60 }
  0x2a   :  { %1729 = vmatprep.subr.bf16.mxu0 %v1728_v13  ;;  %v166_v6 = vld [vmem:[%s3115_s1 + $0x3e8] sm:$0xff]  ;;  %740 = vmatprep.mubr.f32.mxu0 %v425_v62  ;;  %v427_v7 = vcombine.high %v2435_v63, %v2438_v0  ;;  %v117_v9 = vld [vmem:[%s3115_s1 + $0x260] sm:$0xff]  ;;  %v1774_v11 = vpack.c.bf16 %v148_v3, %v147_v2  ;;  %v135_v12 = vld [vmem:[%s3115_s1 + $0x2f0] sm:$0xff] }
  0x2b   :  { %1759 = vmatpush3.bf16.msra.mxu1 %v1758_v16  ;;  %v118_v10 = vld [vmem:[%s3115_s1 + $0x268] sm:$0xff]  ;;  %v136_v13 = vld [vmem:[%s3115_s1 + $0x2f8] sm:$0xff]  ;;  %v1776_v14 = vpack.c.bf16 %v166_v6, %v165_v5  ;;  %v149_v15 = vld [vmem:[%s3115_s1 + $0x360] sm:$0xff] }
  0x2c   :  { %1761 = vmatprep.subr.bf16.mxu1 %v1760_v19  ;;  %810 = vmatprep.mubr.f32.mxu1 %v427_v7  ;;  %v150_v16 = vld [vmem:[%s3115_s1 + $0x368] sm:$0xff]  ;;  %v1746_v17 = vpack.c.bf16 %v118_v10, %v117_v9  ;;  %v167_v18 = vld [vmem:[%s3115_s1 + $0x3f0] sm:$0xff]  ;;  %v168_v19 = vld [vmem:[%s3115_s1 + $0x3f8] sm:$0xff]  ;;  %v1748_v21 = vpack.c.bf16 %v136_v13, %v135_v12 }
  0x2d   :  { %1731 = vmatpush3.bf16.msra.mxu0 %v1730_v23  ;;  %v119_v22 = vld [vmem:[%s3115_s1 + $0x270] sm:$0xff]  ;;  %v120_v23 = vld [vmem:[%s3115_s1 + $0x278] sm:$0xff]  ;;  %v1778_v24 = vpack.c.bf16 %v150_v16, %v149_v15  ;;  %v185_v25 = vld [vmem:[%s3115_s1 + $0x480] sm:$0xff]  ;;  %v1780_v27 = vpack.c.bf16 %v168_v19, %v167_v18 }
  0x2e   :  { %1733 = vmatprep.subr.bf16.mxu0 %v1732_v26  ;;  %v186_v26 = vld [vmem:[%s3115_s1 + $0x488] sm:$0xff]  ;;  %v151_v28 = vld [vmem:[%s3115_s1 + $0x370] sm:$0xff]  ;;  %v152_v29 = vld [vmem:[%s3115_s1 + $0x378] sm:$0xff] }
  0x2f   :  { %1763 = vmatpush3.bf16.msra.mxu1 %v1762_v30  ;;  %v1750_v30 = vpack.c.bf16 %v120_v23, %v119_v22  ;;  %v217_v31 = vld [vmem:[%s3115_s1 + $0x580] sm:$0xff]  ;;  %v218_v32 = vld [vmem:[%s3115_s1 + $0x588] sm:$0xff]  ;;  %v1784_v33 = vpack.c.bf16 %v186_v26, %v185_v25  ;;  %v1782_v36 = vpack.c.bf16 %v152_v29, %v151_v28  ;;  %v187_v37 = vld [vmem:[%s3115_s1 + $0x490] sm:$0xff] }
  0x30   :  { %1765 = vmatprep.subr.bf16.mxu1 %v1764_v34  ;;  %v169_v34 = vld [vmem:[%s3115_s1 + $0x400] sm:$0xff]  ;;  %v170_v35 = vld [vmem:[%s3115_s1 + $0x408] sm:$0xff]  ;;  %v1816_v40 = vpack.c.bf16 %v218_v32, %v217_v31  ;;  %v219_v44 = vld [vmem:[%s3115_s1 + $0x590] sm:$0xff] }
  0x31   :  { %1735 = vmatpush3.bf16.msra.mxu0 %v1734_v38  ;;  %v188_v38 = vld [vmem:[%s3115_s1 + $0x498] sm:$0xff]  ;;  %v201_v41 = vld [vmem:[%s3115_s1 + $0x500] sm:$0xff]  ;;  %v171_v48 = vld [vmem:[%s3115_s1 + $0x410] sm:$0xff] }
  0x32   :  { %1737 = vmatprep.subr.bf16.mxu0 %v1736_v42  ;;  %v202_v42 = vld [vmem:[%s3115_s1 + $0x508] sm:$0xff]  ;;  %v220_v45 = vld [vmem:[%s3115_s1 + $0x598] sm:$0xff]  ;;  %v1788_v47 = vpack.c.bf16 %v188_v38, %v187_v37  ;;  %v189_v53 = vld [vmem:[%s3115_s1 + $0x4a0] sm:$0xff] }
  0x33   :  { %1767 = vmatpush3.bf16.msra.mxu1 %v1766_v43  ;;  %v1786_v43 = vpack.c.bf16 %v170_v35, %v169_v34  ;;  %v172_v49 = vld [vmem:[%s3115_s1 + $0x418] sm:$0xff]  ;;  %v1818_v51 = vpack.c.bf16 %v202_v42, %v201_v41  ;;  %v190_v54 = vld [vmem:[%s3115_s1 + $0x4a8] sm:$0xff]  ;;  %v1820_v55 = vpack.c.bf16 %v220_v45, %v219_v44  ;;  %v221_v58 = vld [vmem:[%s3115_s1 + $0x5a0] sm:$0xff] }
  0x34   :  { %1769 = vmatprep.subr.bf16.mxu1 %v1768_v46  ;;  %v426_v46 = vcombine.low %v2435_v63, %v2438_v0  ;;  %v204_v52 = vld [vmem:[%s3115_s1 + $0x518] sm:$0xff]  ;;  %v174_v57 = vld [vmem:[%s3115_s1 + $0x428] sm:$0xff]  ;;  %v191_v61 = vld [vmem:[%s3115_s1 + $0x4b0] sm:$0xff]  ;;  %v1792_v63 = vpack.c.bf16 %v190_v54, %v189_v53 }
  0x35   :  { %1739 = vmatpush3.bf16.msra.mxu0 %v1738_v50  ;;  %v203_v50 = vld [vmem:[%s3115_s1 + $0x510] sm:$0xff]  ;;  %v222_v60 = vld [vmem:[%s3115_s1 + $0x5a8] sm:$0xff]  ;;  %v192_v62 = vld [vmem:[%s3115_s1 + $0x4b8] sm:$0xff] }
  0x36   :  { %1741 = vmatprep.subr.bf16.mxu0 %v1740_v56  ;;  %v173_v56 = vld [vmem:[%s3115_s1 + $0x420] sm:$0xff]  ;;  %v1822_v0 = vpack.c.bf16 %v204_v52, %v203_v50  ;;  %v1983_v2 = vld [vmem:[%s3114_s0 + $0x58] ss:$36 sps:$4 sm:$0xff]   ;;  %v1824_v3 = vpack.c.bf16 %v222_v60, %v221_v58  ;;  %v206_v5 = vld [vmem:[%s3115_s1 + $0x528] sm:$0xff]  ;;  %v1796_v13 = vpack.c.bf16 %v192_v62, %v191_v61 }
  0x37   :  { %1771 = vmatpush3.bf16.msra.mxu1 %v1770_v59  ;;  %v1790_v59 = vpack.c.bf16 %v172_v49, %v171_v48  ;;  %v223_v6 = vld [vmem:[%s3115_s1 + $0x5b0] sm:$0xff]  ;;  %v1794_v7 = vpack.c.bf16 %v174_v57, %v173_v56  ;;  %v2588_v10 = vrot.slane %v1983_v2, %v2228_v20  ;;  %v1986_v12 = vld [vmem:[%s3114_s0 + $0x5c] ss:$36 sps:$4 sm:$0xff]   ;;  %v194_v18 = vld [vmem:[%s3115_s1 + $0x4c8] sm:$0xff] }
  0x38   :  { %1773 = vmatprep.subr.bf16.mxu1 %v1772_v1  ;;  %v1981_v1 = vld [vmem:[%s3114_s0 + $0x10] ss:$36 sps:$4 sm:$0xff]   ;;  %v176_v15 = vld [vmem:[%s3115_s1 + $0x438] sm:$0xff]  ;;  %v2614_v22 = vrot.slane %v1986_v12, %v2228_v20  ;;  %v226_v28 = vld [vmem:[%s3115_s1 + $0x5c8] sm:$0xff] }
  0x39   :  { %1743 = vmatpush3.bf16.msra.mxu0 %v1742_v4  ;;  %v205_v4 = vld [vmem:[%s3115_s1 + $0x520] sm:$0xff]  ;;  %v2585_v9 = vrot.slane %v1981_v1, %v2228_v20  ;;  %v208_v25 = vld [vmem:[%s3115_s1 + $0x538] sm:$0xff]  ;;  %v178_v32 = vld [vmem:[%s3115_s1 + $0x448] sm:$0xff] }
  0x3a   :  { %1745 = vmatprep.subr.bf16.mxu0 %v1744_v8  ;;  %v224_v8 = vld [vmem:[%s3115_s1 + $0x5b8] sm:$0xff]  ;;  %v1826_v16 = vpack.c.bf16 %v206_v5, %v205_v4  ;;  %v177_v31 = vld [vmem:[%s3115_s1 + $0x440] sm:$0xff]  ;;  %v195_v34 = vld [vmem:[%s3115_s1 + $0x4d0] sm:$0xff] }
  0x3b   :  { %1775 = vmatpush3.bf16.msra.mxu1 %v1774_v11  ;;  %v1985_v11 = vld [vmem:[%s3114_s0 + $0x14] ss:$36 sps:$4 sm:$0xff]   ;;  %v461_v19 = vcombine.high %v2585_v9, %v2588_v10  ;;  %v1828_v23 = vpack.c.bf16 %v224_v8, %v223_v6  ;;  %v209_v37 = vld [vmem:[%s3115_s1 + $0x540] sm:$0xff]  ;;  %v210_v38 = vld [vmem:[%s3115_s1 + $0x548] sm:$0xff] }
  0x3c   :  { %1777 = vmatprep.subr.bf16.mxu1 %v1776_v14  ;;  %v175_v14 = vld [vmem:[%s3115_s1 + $0x430] sm:$0xff]  ;;  %v196_v35 = vld [vmem:[%s3115_s1 + $0x4d8] sm:$0xff]  ;;  %v1834_v45 = vpack.c.bf16 %v210_v38, %v209_v37  ;;  %v229_v52 = vld [vmem:[%s3115_s1 + $0x5e0] sm:$0xff] }
  0x3d   :  { %1747 = vmatpush3.bf16.msra.mxu0 %v1746_v17  ;;  %v193_v17 = vld [vmem:[%s3115_s1 + $0x4c0] sm:$0xff]  ;;  %v1798_v26 = vpack.c.bf16 %v176_v15, %v175_v14  ;;  %v228_v41 = vld [vmem:[%s3115_s1 + $0x5d8] sm:$0xff]  ;;  %v1804_v42 = vpack.c.bf16 %v196_v35, %v195_v34  ;;  %v211_v49 = vld [vmem:[%s3115_s1 + $0x550] sm:$0xff] }
  0x3e   :  { %1749 = vmatprep.subr.bf16.mxu0 %v1748_v21  ;;  %v2611_v21 = vrot.slane %v1985_v11, %v2228_v20  ;;  %v180_v44 = vld [vmem:[%s3115_s1 + $0x458] sm:$0xff]  ;;  %v230_v53 = vld [vmem:[%s3115_s1 + $0x5e8] sm:$0xff]  ;;  %v199_v58 = vld [vmem:[%s3115_s1 + $0x4f0] sm:$0xff] }
  0x3f   :  { %1779 = vmatpush3.bf16.msra.mxu1 %v1778_v24  ;;  %v207_v24 = vld [vmem:[%s3115_s1 + $0x530] sm:$0xff]  ;;  %v212_v50 = vld [vmem:[%s3115_s1 + $0x558] sm:$0xff]  ;;  %v182_v56 = vld [vmem:[%s3115_s1 + $0x468] sm:$0xff]  ;;  %v1840_v60 = vpack.c.bf16 %v230_v53, %v229_v52 }
  0x40   :  { %1781 = vmatprep.subr.bf16.mxu1 %v1780_v27  ;;  %v225_v27 = vld [vmem:[%s3115_s1 + $0x5c0] sm:$0xff]  ;;  %v463_v29 = vcombine.high %v2611_v21, %v2614_v22  ;;  %v1838_v57 = vpack.c.bf16 %v212_v50, %v211_v49  ;;  %v214_v62 = vld [vmem:[%s3115_s1 + $0x568] sm:$0xff]  ;;  %v232_v1 = vld [vmem:[%s3115_s1 + $0x5f8] sm:$0xff] }
  0x41   :  { %1751 = vmatpush3.bf16.msra.mxu0 %v1750_v30  ;;  %v1800_v30 = vpack.c.bf16 %v194_v18, %v193_v17  ;;  %v213_v61 = vld [vmem:[%s3115_s1 + $0x560] sm:$0xff]  ;;  %v184_v4 = vld [vmem:[%s3115_s1 + $0x478] sm:$0xff]  ;;  %v215_v5 = vld [vmem:[%s3115_s1 + $0x570] sm:$0xff] }
  0x42   :  { %1785 = vmatprep.subr.bf16.mxu0 %v1784_v33  ;;  %v1830_v33 = vpack.c.bf16 %v208_v25, %v207_v24  ;;  %v1842_v6 = vpack.c.bf16 %v214_v62, %v213_v61  ;;  %v249_v8 = vld [vmem:[%s3115_s1 + $0x680] sm:$0xff]  ;;  %v250_v11 = vld [vmem:[%s3115_s1 + $0x688] sm:$0xff]  ;;  %v251_v18 = vld [vmem:[%s3115_s1 + $0x690] sm:$0xff] }
  0x43   :  { %1783 = vmatpush3.bf16.msra.mxu1 %v1782_v36  ;;  %v1832_v36 = vpack.c.bf16 %v226_v28, %v225_v27  ;;  %v234_v14 = vld [vmem:[%s3115_s1 + $0x608] sm:$0xff]  ;;  %v281_v15 = vld [vmem:[%s3115_s1 + $0x780] sm:$0xff]  ;;  %v1987_v25 = vld [vmem:[%s3114_s0 + $0x18] ss:$36 sps:$4 sm:$0xff]   ;;  %v460_v27 = vcombine.low %v2585_v9, %v2588_v10 }
  0x44   :  { %741 = vmatmul.mubr.f32.vlgmr.msra.gmra.mrb[2].mxu0 %v424_v39  ;;  %1817 = vmatprep.subr.bf16.mxu1 %v1816_v40  ;;  %v1802_v39 = vpack.c.bf16 %v178_v32, %v177_v31  ;;  %v227_v40 = vld [vmem:[%s3115_s1 + $0x5d0] sm:$0xff]  ;;  %v282_v17 = vld [vmem:[%s3115_s1 + $0x788] sm:$0xff]  ;;  %v2759_v9 = vrot.slane %v1987_v25, %v2228_v20  ;;  %v1991_v34 = vld [vmem:[%s3114_s0 + $0x1c] ss:$36 sps:$4 sm:$0xff]  }
  0x45   :  { %1787 = vmatpush3.bf16.msra.mxu0 %v1786_v43  ;;  %880 = vmatprep.mubr.f32.mxu0 %v461_v19  ;;  %v179_v43 = vld [vmem:[%s3115_s1 + $0x450] sm:$0xff]  ;;  %v1836_v48 = vpack.c.bf16 %v228_v41, %v227_v40  ;;  %v252_v19 = vld [vmem:[%s3115_s1 + $0x698] sm:$0xff]  ;;  %v1880_v28 = vpack.c.bf16 %v282_v17, %v281_v15  ;;  %v1992_v35 = vld [vmem:[%s3114_s0 + $0x64] ss:$36 sps:$4 sm:$0xff]  }
  0x46   :  { %811 = vmatmul.mubr.f32.vlgmr.msra.gmra.mrb[2].mxu1 %v426_v46  ;;  %1789 = vmatprep.subr.bf16.mxu0 %v1788_v47  ;;  %v197_v46 = vld [vmem:[%s3115_s1 + $0x4e0] sm:$0xff]  ;;  %v198_v47 = vld [vmem:[%s3115_s1 + $0x4e8] sm:$0xff]  ;;  %v283_v31 = vld [vmem:[%s3115_s1 + $0x790] sm:$0xff]  ;;  %v1852_v37 = vpack.c.bf16 %v252_v19, %v251_v18 }
  0x47   :  { %1819 = vmatpush3.bf16.msra.mxu1 %v1818_v51  ;;  %950 = vmatprep.mubr.f32.mxu1 %v463_v29  ;;  %v1806_v51 = vpack.c.bf16 %v180_v44, %v179_v43  ;;  %v1808_v54 = vpack.c.bf16 %v198_v47, %v197_v46  ;;  %v265_v29 = vld [vmem:[%s3115_s1 + $0x700] sm:$0xff]  ;;  %v235_v38 = vld [vmem:[%s3115_s1 + $0x610] sm:$0xff]  ;;  %v2790_v43 = vrot.slane %v1992_v35, %v2228_v20  ;;  %v268_v46 = vld [vmem:[%s3115_s1 + $0x718] sm:$0xff] }
  0x48   :  { %1821 = vmatprep.subr.bf16.mxu1 %v1820_v55  ;;  %v181_v55 = vld [vmem:[%s3115_s1 + $0x460] sm:$0xff]  ;;  %v286_v49 = vld [vmem:[%s3115_s1 + $0x7a8] sm:$0xff]  ;;  %v287_v61 = vld [vmem:[%s3115_s1 + $0x7b0] sm:$0xff] }
  0x49   :  { %1791 = vmatpush3.bf16.msra.mxu0 %v1790_v59  ;;  %v200_v59 = vld [vmem:[%s3115_s1 + $0x4f8] sm:$0xff]  ;;  %v253_v41 = vld [vmem:[%s3115_s1 + $0x6a0] sm:$0xff]  ;;  %v238_v53 = vld [vmem:[%s3115_s1 + $0x628] sm:$0xff] }
  0x4a   :  { %1793 = vmatprep.subr.bf16.mxu0 %v1792_v63  ;;  %v1810_v63 = vpack.c.bf16 %v182_v56, %v181_v55  ;;  %v1812_v2 = vpack.c.bf16 %v200_v59, %v199_v58  ;;  %v237_v52 = vld [vmem:[%s3115_s1 + $0x620] sm:$0xff]  ;;  %v255_v55 = vld [vmem:[%s3115_s1 + $0x6b0] sm:$0xff]  ;;  %v256_v56 = vld [vmem:[%s3115_s1 + $0x6b8] sm:$0xff] }
  0x4b   :  { %1823 = vmatpush3.bf16.msra.mxu1 %v1822_v0  ;;  %v231_v0 = vld [vmem:[%s3115_s1 + $0x5f0] sm:$0xff]  ;;  %v269_v58 = vld [vmem:[%s3115_s1 + $0x720] sm:$0xff]  ;;  %v270_v59 = vld [vmem:[%s3115_s1 + $0x728] sm:$0xff] }
  0x4c   :  { %1825 = vmatprep.subr.bf16.mxu1 %v1824_v3  ;;  %v183_v3 = vld [vmem:[%s3115_s1 + $0x470] sm:$0xff]  ;;  %v1844_v12 = vpack.c.bf16 %v232_v1, %v231_v0  ;;  %v288_v62 = vld [vmem:[%s3115_s1 + $0x7b8] sm:$0xff]  ;;  %v242_v15 = vld [vmem:[%s3115_s1 + $0x648] sm:$0xff] }
  0x4d   :  { %1795 = vmatpush3.bf16.msra.mxu0 %v1794_v7  ;;  %v216_v7 = vld [vmem:[%s3115_s1 + $0x578] sm:$0xff]  ;;  %v239_v0 = vld [vmem:[%s3115_s1 + $0x630] sm:$0xff] }
  0x4e   :  { %1797 = vmatprep.subr.bf16.mxu0 %v1796_v13  ;;  %v233_v13 = vld [vmem:[%s3115_s1 + $0x600] sm:$0xff]  ;;  %v1846_v24 = vpack.c.bf16 %v216_v7, %v215_v5  ;;  %v240_v1 = vld [vmem:[%s3115_s1 + $0x638] sm:$0xff]  ;;  %v1892_v7 = vpack.c.bf16 %v288_v62, %v287_v61  ;;  %v259_v17 = vld [vmem:[%s3115_s1 + $0x6d0] sm:$0xff] }
  0x4f   :  { %1827 = vmatpush3.bf16.msra.mxu1 %v1826_v16  ;;  %v1814_v16 = vpack.c.bf16 %v184_v4, %v183_v3  ;;  %v1850_v32 = vpack.c.bf16 %v234_v14, %v233_v13  ;;  %v1890_v3 = vpack.c.bf16 %v270_v59, %v269_v58  ;;  %v272_v4 = vld [vmem:[%s3115_s1 + $0x738] sm:$0xff]  ;;  %v257_v5 = vld [vmem:[%s3115_s1 + $0x6c0] sm:$0xff]  ;;  %v275_v35 = vld [vmem:[%s3115_s1 + $0x750] sm:$0xff] }
  0x50   :  { %1829 = vmatprep.subr.bf16.mxu1 %v1828_v23  ;;  %v1848_v23 = vpack.c.bf16 %v250_v11, %v249_v8  ;;  %v1862_v8 = vpack.c.bf16 %v240_v1, %v239_v0  ;;  %v289_v11 = vld [vmem:[%s3115_s1 + $0x7c0] sm:$0xff]  ;;  %v260_v18 = vld [vmem:[%s3115_s1 + $0x6d8] sm:$0xff]  ;;  %v314_v59 = vld [vmem:[%s3115_s1 + $0x888] sm:$0xff] }
  0x51   :  { %1799 = vmatpush3.bf16.msra.mxu0 %v1798_v26  ;;  %v1989_v26 = vld [vmem:[%s3114_s0 + $0x60] ss:$36 sps:$4 sm:$0xff]   ;;  %v279_v61 = vld [vmem:[%s3115_s1 + $0x770] sm:$0xff]  ;;  %v280_v62 = vld [vmem:[%s3115_s1 + $0x778] sm:$0xff] }
  0x52   :  { %1801 = vmatprep.subr.bf16.mxu0 %v1800_v30  ;;  %v266_v30 = vld [vmem:[%s3115_s1 + $0x708] sm:$0xff]  ;;  %v2762_v10 = vrot.slane %v1989_v26, %v2228_v20  ;;  %v241_v14 = vld [vmem:[%s3115_s1 + $0x640] sm:$0xff]  ;;  %v291_v26 = vld [vmem:[%s3115_s1 + $0x7d0] sm:$0xff] }
  0x53   :  { %1831 = vmatpush3.bf16.msra.mxu1 %v1830_v33  ;;  %v284_v33 = vld [vmem:[%s3115_s1 + $0x798] sm:$0xff]  ;;  %v1882_v40 = vpack.c.bf16 %v266_v30, %v265_v29  ;;  %v1866_v25 = vpack.c.bf16 %v242_v15, %v241_v14  ;;  %v243_v29 = vld [vmem:[%s3115_s1 + $0x650] sm:$0xff]  ;;  %v313_v58 = vld [vmem:[%s3115_s1 + $0x880] sm:$0xff] }
  0x54   :  { %1833 = vmatprep.subr.bf16.mxu1 %v1832_v36  ;;  %v462_v36 = vcombine.low %v2611_v21, %v2614_v22  ;;  %v497_v21 = vcombine.high %v2759_v9, %v2762_v10  ;;  %v2787_v22 = vrot.slane %v1991_v34, %v2228_v20  ;;  %v1884_v44 = vpack.c.bf16 %v284_v33, %v283_v31  ;;  %v244_v30 = vld [vmem:[%s3115_s1 + $0x658] sm:$0xff]  ;;  %v262_v33 = vld [vmem:[%s3115_s1 + $0x6e8] sm:$0xff]  ;;  %v299_v14 = vld [vmem:[%s3115_s1 + $0x810] sm:$0xff] }
  0x55   :  { %1803 = vmatpush3.bf16.msra.mxu0 %v1802_v39  ;;  %v236_v39 = vld [vmem:[%s3115_s1 + $0x618] sm:$0xff] }
  0x56   :  { %1805 = vmatprep.subr.bf16.mxu0 %v1804_v42  ;;  %v254_v42 = vld [vmem:[%s3115_s1 + $0x6a8] sm:$0xff]  ;;  %v1854_v47 = vpack.c.bf16 %v236_v39, %v235_v38  ;;  %v499_v50 = vcombine.high %v2787_v22, %v2790_v43  ;;  %v293_v38 = vld [vmem:[%s3115_s1 + $0x7e0] sm:$0xff]  ;;  %v300_v15 = vld [vmem:[%s3115_s1 + $0x818] sm:$0xff] }
  0x57   :  { %1835 = vmatpush3.bf16.msra.mxu1 %v1834_v45  ;;  %v267_v45 = vld [vmem:[%s3115_s1 + $0x710] sm:$0xff]  ;;  %v294_v39 = vld [vmem:[%s3115_s1 + $0x7e8] sm:$0xff] }
  0x58   :  { %1837 = vmatprep.subr.bf16.mxu1 %v1836_v48  ;;  %v285_v48 = vld [vmem:[%s3115_s1 + $0x7a0] sm:$0xff] }
  0x59   :  { %1807 = vmatpush3.bf16.msra.mxu0 %v1806_v51  ;;  %v1856_v51 = vpack.c.bf16 %v254_v42, %v253_v41  ;;  %v245_v41 = vld [vmem:[%s3115_s1 + $0x660] sm:$0xff]  ;;  %v246_v42 = vld [vmem:[%s3115_s1 + $0x668] sm:$0xff] }
  0x5a   :  { %1809 = vmatprep.subr.bf16.mxu0 %v1808_v54  ;;  %v1886_v54 = vpack.c.bf16 %v268_v46, %v267_v45  ;;  %v264_v45 = vld [vmem:[%s3115_s1 + $0x6f8] sm:$0xff]  ;;  %v1904_v46 = vpack.c.bf16 %v294_v39, %v293_v38  ;;  %v325_v39 = vld [vmem:[%s3115_s1 + $0x8e0] sm:$0xff] }
  0x5b   :  { %1839 = vmatpush3.bf16.msra.mxu1 %v1838_v57  ;;  %v1888_v57 = vpack.c.bf16 %v286_v49, %v285_v48  ;;  %v278_v48 = vld [vmem:[%s3115_s1 + $0x768] sm:$0xff]  ;;  %v295_v49 = vld [vmem:[%s3115_s1 + $0x7f0] sm:$0xff]  ;;  %v308_v38 = vld [vmem:[%s3115_s1 + $0x858] sm:$0xff] }
  0x5c   :  { %1841 = vmatprep.subr.bf16.mxu1 %v1840_v60  ;;  %v1858_v60 = vpack.c.bf16 %v238_v53, %v237_v52  ;;  %v1993_v52 = vld [vmem:[%s3114_s0 + $0x20] ss:$36 sps:$4 sm:$0xff]   ;;  %v1994_v53 = vld [vmem:[%s3114_s0 + $0x68] ss:$36 sps:$4 sm:$0xff]  }
  0x5d   :  { %1811 = vmatpush3.bf16.msra.mxu0 %v1810_v63  ;;  %v1860_v63 = vpack.c.bf16 %v256_v56, %v255_v55  ;;  %v247_v55 = vld [vmem:[%s3115_s1 + $0x670] sm:$0xff]  ;;  %v248_v56 = vld [vmem:[%s3115_s1 + $0x678] sm:$0xff]  ;;  %v2951_v0 = vrot.slane %v1993_v52, %v2228_v20  ;;  %v2954_v1 = vrot.slane %v1994_v53, %v2228_v20  ;;  %v1167_v53 = vld [vmem:[%s3117_s3] sm:$0xff] }
  0x5e   :  { %1813 = vmatprep.subr.bf16.mxu0 %v1812_v2  ;;  %v271_v2 = vld [vmem:[%s3115_s1 + $0x730] sm:$0xff]  ;;  %v316_v20 = vld [vmem:[%s3115_s1 + $0x898] sm:$0xff] }
  0x5f   :  { %1843 = vmatpush3.bf16.msra.mxu1 %v1842_v6  ;;  %v258_v6 = vld [vmem:[%s3115_s1 + $0x6c8] sm:$0xff]  ;;  %v516_v52 = vcombine.low %v2951_v0, %v2954_v1 }
  0x60   :  { %1845 = vmatprep.subr.bf16.mxu1 %v1844_v12  ;;  %v290_v12 = vld [vmem:[%s3115_s1 + $0x7c8] sm:$0xff]  ;;  %v1864_v13 = vpack.c.bf16 %v258_v6, %v257_v5  ;;  %v1910_v5 = vpack.c.bf16 %v280_v62, %v279_v61  ;;  %v315_v6 = vld [vmem:[%s3115_s1 + $0x890] sm:$0xff] }
  0x61   :  { %1815 = vmatpush3.bf16.msra.mxu0 %v1814_v16  ;;  %v1894_v16 = vpack.c.bf16 %v272_v4, %v271_v2  ;;  %v1896_v19 = vpack.c.bf16 %v290_v12, %v289_v11  ;;  %v1912_v2 = vpack.c.bf16 %v314_v59, %v313_v58  ;;  %v298_v4 = vld [vmem:[%s3115_s1 + $0x808] sm:$0xff]  ;;  %v517_v11 = vcombine.high %v2951_v0, %v2954_v1  ;;  %v1170_v58 = vld [vmem:[%s3117_s3 + $0x18] sm:$0xff] }
  0x62   :  { %1849 = vmatprep.subr.bf16.mxu0 %v1848_v23  ;;  %v273_v23 = vld [vmem:[%s3115_s1 + $0x740] sm:$0xff]  ;;  %v498_v12 = vcombine.low %v2787_v22, %v2790_v43  ;;  %v1918_v22 = vpack.c.bf16 %v300_v15, %v299_v14  ;;  %v1172_v61 = vld [vmem:[%s3117_s3 + $0x28] sm:$0xff]  ;;  %v1174_v0 = vld [vmem:[%s3117_s3 + $0x38] sm:$0xff] }
  0x63   :  { %1847 = vmatpush3.bf16.msra.mxu1 %v1846_v24  ;;  %v274_v24 = vld [vmem:[%s3115_s1 + $0x748] sm:$0xff] }
  0x64   :  { %881 = vmatmul.mubr.f32.vlgmr.msra.gmra.mrb[4].mxu0 %v460_v27  ;;  %1881 = vmatprep.subr.bf16.mxu1 %v1880_v28  ;;  %v292_v27 = vld [vmem:[%s3115_s1 + $0x7d8] sm:$0xff]  ;;  %v1868_v28 = vpack.c.bf16 %v260_v18, %v259_v17  ;;  %v1898_v31 = vpack.c.bf16 %v274_v24, %v273_v23  ;;  %v302_v17 = vld [vmem:[%s3115_s1 + $0x828] sm:$0xff]  ;;  %v319_v18 = vld [vmem:[%s3115_s1 + $0x8b0] sm:$0xff] }
  0x65   :  { %1851 = vmatpush3.bf16.msra.mxu0 %v1850_v32  ;;  %1020 = vmatprep.mubr.f32.mxu0 %v497_v21  ;;  %v261_v32 = vld [vmem:[%s3115_s1 + $0x6e0] sm:$0xff]  ;;  %v1900_v34 = vpack.c.bf16 %v292_v27, %v291_v26  ;;  %v304_v26 = vld [vmem:[%s3115_s1 + $0x838] sm:$0xff] }
  0x66   :  { %951 = vmatmul.mubr.f32.vlgmr.msra.gmra.mrb[4].mxu1 %v462_v36  ;;  %1853 = vmatprep.subr.bf16.mxu0 %v1852_v37  ;;  %v276_v36 = vld [vmem:[%s3115_s1 + $0x758] sm:$0xff]  ;;  %v1870_v37 = vpack.c.bf16 %v244_v30, %v243_v29  ;;  %v321_v27 = vld [vmem:[%s3115_s1 + $0x8c0] sm:$0xff] }
  0x67   :  { %1883 = vmatpush3.bf16.msra.mxu1 %v1882_v40  ;;  %1090 = vmatprep.mubr.f32.mxu1 %v499_v50  ;;  %v1872_v40 = vpack.c.bf16 %v262_v33, %v261_v32  ;;  %v1902_v21 = vpack.c.bf16 %v276_v36, %v275_v35  ;;  %v1874_v50 = vpack.c.bf16 %v246_v42, %v245_v41  ;;  %v306_v32 = vld [vmem:[%s3115_s1 + $0x848] sm:$0xff]  ;;  %v323_v33 = vld [vmem:[%s3115_s1 + $0x8d0] sm:$0xff] }
  0x68   :  { %1885 = vmatprep.subr.bf16.mxu1 %v1884_v44  ;;  %v263_v44 = vld [vmem:[%s3115_s1 + $0x6f0] sm:$0xff] }
  0x69   :  { %1855 = vmatpush3.bf16.msra.mxu0 %v1854_v47  ;;  %v277_v47 = vld [vmem:[%s3115_s1 + $0x760] sm:$0xff] }
  0x6a   :  { %1857 = vmatprep.subr.bf16.mxu0 %v1856_v51  ;;  %v296_v51 = vld [vmem:[%s3115_s1 + $0x7f8] sm:$0xff] }
  0x6b   :  { %1887 = vmatpush3.bf16.msra.mxu1 %v1886_v54  ;;  %v1876_v54 = vpack.c.bf16 %v264_v45, %v263_v44  ;;  %v310_v44 = vld [vmem:[%s3115_s1 + $0x868] sm:$0xff]  ;;  %v327_v45 = vld [vmem:[%s3115_s1 + $0x8f0] sm:$0xff] }
  0x6c   :  { %1889 = vmatprep.subr.bf16.mxu1 %v1888_v57  ;;  %v1906_v57 = vpack.c.bf16 %v278_v48, %v277_v47 }
  0x6d   :  { %1859 = vmatpush3.bf16.msra.mxu0 %v1858_v60  ;;  %v1908_v60 = vpack.c.bf16 %v296_v51, %v295_v49  ;;  %v311_v49 = vld [vmem:[%s3115_s1 + $0x870] sm:$0xff] }
  0x6e   :  { %1861 = vmatprep.subr.bf16.mxu0 %v1860_v63  ;;  %v1878_v63 = vpack.c.bf16 %v248_v56, %v247_v55  ;;  %v1169_v55 = vld [vmem:[%s3117_s3 + $0x10] sm:$0xff]  ;;  %v2024_v56 = vmov 0.0|0.0  }
  0x6f   :  { %1891 = vmatpush3.bf16.msra.mxu1 %v1890_v3  ;;  %v297_v3 = vld [vmem:[%s3115_s1 + $0x800] sm:$0xff]  ;;  %v1948_v59 = vpack.c.bf16 %v1170_v58, %v1169_v55 }
  0x70   :  { %1893 = vmatprep.subr.bf16.mxu1 %v1892_v7  ;;  %v496_v7 = vcombine.low %v2759_v9, %v2762_v10  ;;  %v317_v9 = vld [vmem:[%s3115_s1 + $0x8a0] sm:$0xff]  ;;  %v318_v10 = vld [vmem:[%s3115_s1 + $0x8a8] sm:$0xff] }
  0x71   :  { %1863 = vmatpush3.bf16.msra.mxu0 %v1862_v8  ;;  %v1914_v8 = vpack.c.bf16 %v298_v4, %v297_v3  ;;  %v1920_v43 = vpack.c.bf16 %v318_v10, %v317_v9  ;;  %v1176_v3 = vld [vmem:[%s3117_s3 + $0x48] sm:$0xff] }
  0x72   :  { %1865 = vmatprep.subr.bf16.mxu0 %v1864_v13  ;;  %v1916_v13 = vpack.c.bf16 %v316_v20, %v315_v6  ;;  %v1177_v6 = vld [vmem:[%s3117_s3 + $0x50] sm:$0xff]  ;;  %v1178_v20 = vld [vmem:[%s3117_s3 + $0x58] sm:$0xff] }
  0x73   :  { %1895 = vmatpush3.bf16.msra.mxu1 %v1894_v16  ;;  %v301_v16 = vld [vmem:[%s3115_s1 + $0x820] sm:$0xff] }
  0x74   :  { %1897 = vmatprep.subr.bf16.mxu1 %v1896_v19  ;;  %v320_v19 = vld [vmem:[%s3115_s1 + $0x8b8] sm:$0xff]  ;;  %v1922_v23 = vpack.c.bf16 %v302_v17, %v301_v16 }
  0x75   :  { %1867 = vmatpush3.bf16.msra.mxu0 %v1866_v25  ;;  %v1924_v24 = vpack.c.bf16 %v320_v19, %v319_v18  ;;  %v303_v25 = vld [vmem:[%s3115_s1 + $0x830] sm:$0xff] }
  0x76   :  { %1869 = vmatprep.subr.bf16.mxu0 %v1868_v28  ;;  %v322_v28 = vld [vmem:[%s3115_s1 + $0x8c8] sm:$0xff]  ;;  %v1926_v29 = vpack.c.bf16 %v304_v26, %v303_v25 }
  0x77   :  { %1899 = vmatpush3.bf16.msra.mxu1 %v1898_v31  ;;  %v1928_v30 = vpack.c.bf16 %v322_v28, %v321_v27  ;;  %v305_v31 = vld [vmem:[%s3115_s1 + $0x840] sm:$0xff] }
  0x78   :  { %1901 = vmatprep.subr.bf16.mxu1 %v1900_v34  ;;  %v324_v34 = vld [vmem:[%s3115_s1 + $0x8d8] sm:$0xff]  ;;  %v1930_v35 = vpack.c.bf16 %v306_v32, %v305_v31 }
  0x79   :  { %1871 = vmatpush3.bf16.msra.mxu0 %v1870_v37  ;;  %v1932_v36 = vpack.c.bf16 %v324_v34, %v323_v33  ;;  %v307_v37 = vld [vmem:[%s3115_s1 + $0x850] sm:$0xff] }
  0x7a   :  { %1873 = vmatprep.subr.bf16.mxu0 %v1872_v40  ;;  %v326_v40 = vld [vmem:[%s3115_s1 + $0x8e8] sm:$0xff]  ;;  %v1934_v41 = vpack.c.bf16 %v308_v38, %v307_v37 }
  0x7b   :  { %1903 = vmatpush3.bf16.msra.mxu1 %v1902_v21  ;;  %v1936_v42 = vpack.c.bf16 %v326_v40, %v325_v39  ;;  %v309_v21 = vld [vmem:[%s3115_s1 + $0x860] sm:$0xff] }
  0x7c   :  { %1905 = vmatprep.subr.bf16.mxu1 %v1904_v46  ;;  %v328_v46 = vld [vmem:[%s3115_s1 + $0x8f8] sm:$0xff]  ;;  %v1938_v47 = vpack.c.bf16 %v310_v44, %v309_v21 }
  0x7d   :  { %1875 = vmatpush3.bf16.msra.mxu0 %v1874_v50  ;;  %v1940_v48 = vpack.c.bf16 %v328_v46, %v327_v45  ;;  %v312_v50 = vld [vmem:[%s3115_s1 + $0x878] sm:$0xff] }
  0x7e   :  { %1877 = vmatprep.subr.bf16.mxu0 %v1876_v54  ;;  %v1942_v51 = vpack.c.bf16 %v312_v50, %v311_v49  ;;  %v1168_v54 = vld [vmem:[%s3117_s3 + $0x8] sm:$0xff] }
  0x7f   :  { %1907 = vmatpush3.bf16.msra.mxu1 %v1906_v57  ;;  %v1945_v57 = vpack.c.bf16 %v1168_v54, %v1167_v53 }
  0x80   :  { %1909 = vmatprep.subr.bf16.mxu1 %v1908_v60  ;;  %v1171_v60 = vld [vmem:[%s3117_s3 + $0x20] sm:$0xff] }
  0x81   :  { %1879 = vmatpush3.bf16.msra.mxu0 %v1878_v63  ;;  %v1951_v62 = vpack.c.bf16 %v1172_v61, %v1171_v60  ;;  %v1173_v63 = vld [vmem:[%s3117_s3 + $0x30] sm:$0xff] }
  0x82   :  { %1913 = vmatprep.subr.bf16.mxu0 %v1912_v2  ;;  %v1954_v1 = vpack.c.bf16 %v1174_v0, %v1173_v63  ;;  %v1175_v2 = vld [vmem:[%s3117_s3 + $0x40] sm:$0xff] }
  0x83   :  { %1911 = vmatpush3.bf16.msra.mxu1 %v1910_v5  ;;  %v1957_v4 = vpack.c.bf16 %v1176_v3, %v1175_v2 }
  0x84   :  { %1021 = vmatmul.mubr.f32.vlgmr.msra.gmra.mrb[6].mxu0 %v496_v7  ;;  %1944 = vmatprep.subr.bf16.mxu1 %v2024_v56  ;;  %v1294_v7 = vld [vmem:[%s3116_s2] ss:$0 sm:$0xff] }
  0x85   :  { %1915 = vmatpush3.bf16.msra.mxu0 %v1914_v8  ;;  %1160 = vmatprep.mubr.f32.mxu0 %v517_v11  ;;  %v1960_v11 = vpack.c.bf16 %v1178_v20, %v1177_v6 }
  0x86   :  { %1091 = vmatmul.mubr.f32.vlgmr.msra.gmra.mrb[6].mxu1 %v498_v12  ;;  %1917 = vmatprep.subr.bf16.mxu0 %v1916_v13 }
  0x87   :  { %1946 = vmatpush3.bf16.msra.mxu1 %v1945_v57 }
  0x88   :  { %1947 = vmatprep.subr.bf16.mxu1 %v2024_v56 }
  0x89   :  { %1919 = vmatpush3.bf16.msra.mxu0 %v1918_v22  ;;  %v2025_v22 = vmov 0.0  }
  0x8a   :  { %1921 = vmatprep.subr.bf16.mxu0 %v1920_v43  ;;  %v1179_v43 = vld [vmem:[%s3117_s3 + $0x60] sm:$0xf]  ;;  %1653 = vmatprep.mubr.msk.f32.mxu1 %vm2026_vm1, %v2025_v22 }
  0x8b   :  { %1949 = vmatpush3.bf16.msra.mxu1 %v1948_v59 }
  0x8c   :  { %1950 = vmatprep.subr.bf16.mxu1 %v2024_v56 }
  0x8d   :  { %1923 = vmatpush3.bf16.msra.mxu0 %v1922_v23 }
  0x8e   :  { %1925 = vmatprep.subr.bf16.mxu0 %v1924_v24 }
  0x8f   :  { %1952 = vmatpush3.bf16.msra.mxu1 %v1951_v62 }
  0x90   :  { %1953 = vmatprep.subr.bf16.mxu1 %v2024_v56 }
  0x91   :  { %1927 = vmatpush3.bf16.msra.mxu0 %v1926_v29 }
  0x92   :  { %1929 = vmatprep.subr.bf16.mxu0 %v1928_v30 }
  0x93   :  { %1955 = vmatpush3.bf16.msra.mxu1 %v1954_v1 }
  0x94   :  { %1956 = vmatprep.subr.bf16.mxu1 %v2024_v56 }
  0x95   :  { %1931 = vmatpush3.bf16.msra.mxu0 %v1930_v35 }
  0x96   :  { %1933 = vmatprep.subr.bf16.mxu0 %v1932_v36 }
  0x97   :  { %1958 = vmatpush3.bf16.msra.mxu1 %v1957_v4 }
  0x98   :  { %1959 = vmatprep.subr.bf16.mxu1 %v2024_v56 }
  0x99   :  { %1935 = vmatpush3.bf16.msra.mxu0 %v1934_v41 }
  0x9a   :  { %1937 = vmatprep.subr.bf16.mxu0 %v1936_v42 }
  0x9b   :  { %1961 = vmatpush3.bf16.msra.mxu1 %v1960_v11 }
  0x9c   :  { %1651 = vmatprep.subr.mxu1 %v2025_v22 }
  0x9d   :  { %1939 = vmatpush3.bf16.msra.mxu0 %v1938_v47 }
  0x9e   :  { %1941 = vmatprep.subr.bf16.mxu0 %v1940_v48  ;;  %v1295_v48 = vld [vmem:[%s3118_s4] ss:$0 sm:$0xff] }
  0x9f   :  { %1652 = vmatpush3.msk.msra.mxu1 %vm1191_vm0, %v1179_v43 }
  0xa1   :  { %1943 = vmatpush3.bf16.msra.mxu0 %v1942_v51 }
  0xa4   :  { %1161 = vmatmul.mubr.f32.vlgmr.msra.gmra.mrb[8].mxu0 %v516_v52 }
  0xf7   :  { %v1330_v5 = vpop.f32.mrb[0].mxu0 }
  0xf8   :  { %v1331_v8 = vpop.f32.mrb[1].mxu0 }
  0xf9   :  { %v1332_v12 = vadd.f32 %v1331_v8, %v1330_v5  ;;  %v1365_v13 = vpop.f32.mrb[0].mxu1 }
  0xfa   :  { %v1366_v14 = vpop.f32.mrb[1].mxu1 }
  0xfb   :  { %v603_v15 = vadd.f32 %v1332_v12, %v1294_v7  ;;  %v1367_v9 = vadd.f32 %v1366_v14, %v1365_v13 }
  0xfd   :  { %v673_v10 = vadd.f32 %v1367_v9, %v603_v15 }
 0x117   :  { %v1400_v16 = vpop.f32.mrb[2].mxu0 }
 0x118   :  { %v1401_v17 = vpop.f32.mrb[3].mxu0 }
 0x119   :  { %v1402_v18 = vadd.f32 %v1401_v17, %v1400_v16  ;;  %v1435_v19 = vpop.f32.mrb[2].mxu1 }
 0x11a   :  { %v1436_v23 = vpop.f32.mrb[3].mxu1 }
 0x11b   :  { %v743_v24 = vadd.f32 %v1402_v18, %v673_v10  ;;  %v1437_v25 = vadd.f32 %v1436_v23, %v1435_v19 }
 0x11d   :  { %v813_v26 = vadd.f32 %v1437_v25, %v743_v24 }
 0x137   :  { %v1470_v27 = vpop.f32.mrb[4].mxu0 }
 0x138   :  { %v1471_v28 = vpop.f32.mrb[5].mxu0 }
 0x139   :  { %v1472_v29 = vadd.f32 %v1471_v28, %v1470_v27  ;;  %v1505_v30 = vpop.f32.mrb[4].mxu1 }
 0x13a   :  { %v1506_v31 = vpop.f32.mrb[5].mxu1 }
 0x13b   :  { %v883_v32 = vadd.f32 %v1472_v29, %v813_v26  ;;  %v1507_v33 = vadd.f32 %v1506_v31, %v1505_v30 }
 0x13d   :  { %v953_v34 = vadd.f32 %v1507_v33, %v883_v32 }
 0x157   :  { %v1540_v35 = vpop.f32.mrb[6].mxu0 }
 0x158   :  { %v1541_v36 = vpop.f32.mrb[7].mxu0 }
 0x159   :  { %v1542_v37 = vadd.f32 %v1541_v36, %v1540_v35  ;;  %v1575_v38 = vpop.f32.mrb[6].mxu1 }
 0x15a   :  { %v1576_v39 = vpop.f32.mrb[7].mxu1 }
 0x15b   :  { %v1023_v40 = vadd.f32 %v1542_v37, %v953_v34  ;;  %v1577_v41 = vadd.f32 %v1576_v39, %v1575_v38 }
 0x15d   :  { %v1093_v42 = vadd.f32 %v1577_v41, %v1023_v40 }
 0x177   :  { %v1610_v21 = vpop.f32.mrb[8].mxu0 }
 0x178   :  { %v1611_v44 = vpop.f32.mrb[9].mxu0 }
 0x179   :  { %v1612_v45 = vadd.f32 %v1611_v44, %v1610_v21 }
 0x17b   :  { %v1163_v46 = vadd.f32 %v1612_v45, %v1093_v42 }
 0x17d   :  { %v1166_v47 = vmax.f32 %v1163_v46, 0.0 }
 0x17f   :  { %1654 = vmatmul.mubr.msk.f32.vlgmr.msra.gmra.mrb[8].mxu1 %vm1187_vm2, %v1166_v47 }
 0x252   :  { %v1261_v49 = vpop.f32.mrb[8].mxu1 }
 0x253   :  { %v1262_v50 = vadd.f32 %v1295_v48, %v1261_v49  ;;  %v1655_v51 = vpop.f32.mrb[9].mxu1 }
 0x255   :  { %v1266_v52 = vsel %vm1265_vm3, %v1262_v50, -inf }
 0x256   :  { %1267 = vmax.xlane.f32.xlu0 %v1266_v52 }
 0x2e3   :  { %v1268_v53 = vpop.xlane.xlu0 %1267 }
 0x2e4   :  { %v1269_v54 = vsub.f32 %v1262_v50, %v1268_v53 }
 0x2e6   :  { %v1270_v55 = vmul.f32 1.442695, %v1269_v54 }
 0x2e8   :  { %1995 = vpow2.f32 %v1270_v55 }
 0x2f2   :  { %v1996_v56 = vpop.eup %1995 }
 0x2f3   :  { %v1272_v57 = vsel %vm1265_vm3, %v1996_v56, 0.0 }
 0x2f4   :  { %1273 = vadd.xlane.f32.xlu0 %v1272_v57 }
 0x381   :  { %v1274_v58 = vpop.xlane.xlu0 %1273 }
 0x382   :  { %1997 = vrcp.f32 %v1274_v58 }
 0x38c   :  { %v1998_v59 = vpop.eup %1997 }
 0x38d   :  { %v1276_v60 = vmul.f32 %v1998_v59, %v1996_v56 }
 0x38f   :  { %1277 = vst.msk [vmem:[#allocation2] sm:$0xff] %vm1265_vm3, %v1276_v60 }
 0x390   :  { %1282 = vsyncadd [#allocation3], 96  ;;  %s2027_s4 = smov [#allocation2]  }
 0x391   :  { %s1283_s28 = sshll.u32 %s2027_s4, 4  ;;  %s1284_s28 = int_to_ptr.vmem [resolvable:$true] %s1283_s28 }
 0x392   :  { %s1999_s29 = scalar_lea.vmem %s1284_s28, 32  ;;  %s2003_s30 = scalar_lea.vmem %s1284_s28, 128 }
 0x393   :  { %p2000_p0 = scmp.ne.s32.totalorder %s1284_s28, %s1999_s29  ;;  %p2004_p1 = scmp.lt.s32.totalorder %s1284_s28, %s1284_s28 }
 0x394   :  { %p2005_p2 = scmp.lt.s32.totalorder %s2003_s30, %s1999_s29 }
 0x396   :  { %p2006_p3 = por %p2005_p2, %p2004_p1 }
 0x398   :  { %p2007_p4 = pnand %p2006_p3, %p2000_p0 }
 0x39a   :  { %2010 = shalt.err (!%p2007_p4)
}
 0x39b   :  { %s2011_s1 = scalar_lea.hbm %s3119_s5, 32 }
 0x39c   :  { %p2012_p5 = scmp.ne.s32.totalorder %s3119_s5, %s2011_s1  ;;  %p2015_p6 = scmp.lt.u32.totalorder %s2011_s1, %s3119_s5 }
 0x39e   :  { %p2017_p7 = pnand %p2015_p6, %p2012_p5 }
 0x3a0   :  { %2020 = shalt.err (!%p2017_p7)
}
 0x3a1   :  { %s2028_s12 = smov 32   ;;  %s2029_s13 = smov 2  }
 0x3a2   :  { %1289 = dma.vmem_to_hbm [thread:$0]  %s1284_s28, 32, %s3119_s5, [#allocation3], %s2028_s12, %s2028_s12, %s2029_s13  }
 0x3a3   :  { %2021 = dma.done.wait [#allocation3], 128  }
 0x3a4   :  { %2022 = vsyncadd [#allocation3], 4294967168 }
 0x3a5   :  { %1293 = vsyncpa [#allocation3], 1 }

</bundles_post_ra>
